<compile_context>
chip_gen: v6e
topology: v6e:2x2x1
jax: 0.10.0
libtpu: 0.0.40
codegen_flags: <defaults>
</compile_context>

<pallas_src>
import functools

import jax
import jax.numpy as jnp
from jax.experimental import pallas as pl
from jax.experimental.pallas import tpu as pltpu

_LANE = 128        # lane width: pad the tiny n_actions output dim to this
_SUBLANE = 16      # bf16 sublane packing: batch tiles rounded to this


def _round_up(x, m):
    return (x + m - 1) // m * m


def _mlp_kernel(x_ref, w1_ref, w2_ref, b2_ref, out_ref):
    # Layer 1: (TB, OBS_PAD)bf16 @ (OBS_PAD, H)bf16 -> f32 on the MXU.  b1 is
    # already folded into w1 (the input carries a ones column), so the only
    # VPU work here is the ReLU, done in f32.
    h = jnp.dot(x_ref[...], w1_ref[...], preferred_element_type=jnp.float32)
    h = jnp.maximum(h, 0.0)
    # Layer 2: (TB, H)bf16 @ (H, ACT_PAD)bf16 -> f32, bias add in f32,
    # lane-dense (TB, 128) store (unmasked full-lane vst).
    o = jnp.dot(h.astype(jnp.bfloat16), w2_ref[...],
                preferred_element_type=jnp.float32)
    out_ref[...] = (o + b2_ref[...]).astype(out_ref.dtype)


def prepare_params(w1, b1, w2, b2):
    """One-time host-side repack of PyTorch-layout parameters.

    w1: (obs, hidden)      b1: (1, hidden) or (hidden,)
    w2: (hidden, n_actions) b2: (1, n_actions) or (n_actions,)
    Returns (w1_aug[bf16], w2_pad[bf16], b2_pad[f32]).
    """
    obs, hidden = w1.shape
    n_actions = w2.shape[1]
    b1 = jnp.reshape(b1, (1, hidden)).astype(jnp.float32)
    b2 = jnp.reshape(b2, (1, n_actions)).astype(jnp.float32)

    # Fold b1 into w1 as an extra row (matched by a ones column in x) and pad
    # the contraction dim up to a multiple of 8 once, on the host.
    obs_pad = _round_up(obs + 1, 8)
    w1_aug = jnp.concatenate([w1.astype(jnp.float32), b1], axis=0)
    w1_aug = jnp.pad(w1_aug, ((0, obs_pad - (obs + 1)), (0, 0)))

    # Pad the tiny output dim to a full lane width (sliced back after the call).
    act_pad = _round_up(n_actions, _LANE)
    w2_pad = jnp.pad(w2.astype(jnp.float32), ((0, 0), (0, act_pad - n_actions)))
    b2_pad = jnp.pad(b2, ((0, 0), (0, act_pad - n_actions)))

    return w1_aug.astype(jnp.bfloat16), w2_pad.astype(jnp.bfloat16), b2_pad


@functools.partial(jax.jit, static_argnames=("obs_size", "n_actions", "batch_tile"))
def net_forward(x, w1_aug, w2_pad, b2_pad, *, obs_size, n_actions,
                batch_tile=1024):
    """Forward pass of Net on prepared params.  x: (B, obs_size) f32."""
    B = x.shape[0]
    obs_pad, hidden = w1_aug.shape
    act_pad = w2_pad.shape[1]

    # Batch tile: whole (padded) batch if small, else stream `batch_tile` rows
    # per grid step (weights stay resident across steps).
    tb = min(batch_tile, _round_up(B, _SUBLANE))
    b_pad = _round_up(B, tb)
    grid_b = b_pad // tb

    # Host-side activation repack (fuses into surrounding XLA): append the
    # ones column that carries b1, pad rows/cols, cast to bf16.
    ones = jnp.ones((B, 1), jnp.float32)
    x_aug = jnp.concatenate([x.astype(jnp.float32), ones], axis=1)
    x_aug = jnp.pad(x_aug, ((0, b_pad - B), (0, obs_pad - (obs_size + 1))))
    x_aug = x_aug.astype(jnp.bfloat16)

    out_pad = pl.pallas_call(
        _mlp_kernel,
        out_shape=jax.ShapeDtypeStruct((b_pad, act_pad), jnp.float32),
        grid_spec=pltpu.PrefetchScalarGridSpec(
            num_scalar_prefetch=0,
            grid=(grid_b,),
            in_specs=[
                pl.BlockSpec((tb, obs_pad), lambda i: (i, 0)),      # x tile
                pl.BlockSpec((obs_pad, hidden), lambda i: (0, 0)),  # w1 (+b1)
                pl.BlockSpec((hidden, act_pad), lambda i: (0, 0)),  # w2
                pl.BlockSpec((1, act_pad), lambda i: (0, 0)),       # b2
            ],
            out_specs=pl.BlockSpec((tb, act_pad), lambda i: (i, 0)),
        ),
        compiler_params=pltpu.CompilerParams(
            dimension_semantics=("parallel",)),
    )(x_aug, w1_aug, w2_pad, b2_pad)

    return out_pad[:B, :n_actions]


def reference_forward(x, w1, b1, w2, b2):
    """Pure-f32 PyTorch-equivalent forward."""
    h = jnp.maximum(x @ w1 + b1, 0.0)
    return h @ w2 + b2


def reference_forward_bf16(x, w1_aug, w2_pad, b2_pad, obs_size, n_actions):
    """Pure-JAX path applying the same bf16 casts / bias fold as the kernel."""
    B = x.shape[0]
    obs_pad = w1_aug.shape[0]
    ones = jnp.ones((B, 1), jnp.float32)
    x_aug = jnp.concatenate([x.astype(jnp.float32), ones], axis=1)
    x_aug = jnp.pad(x_aug, ((0, 0), (0, obs_pad - (obs_size + 1))))
    x_aug = x_aug.astype(jnp.bfloat16)
    h = jnp.maximum(jnp.dot(x_aug, w1_aug, preferred_element_type=jnp.float32), 0.0)
    o = jnp.dot(h.astype(jnp.bfloat16), w2_pad,
                preferred_element_type=jnp.float32) + b2_pad
    return o[:, :n_actions]


if __name__ == "__main__":
    # CartPole-like sizes: obs_size=4, hidden_size=128, n_actions=2, batch=16.
    obs_size, hidden_size, n_actions, batch = 4, 128, 2, 16

    key = jax.random.PRNGKey(0)
    kx, kw1, kb1, kw2, kb2 = jax.random.split(key, 5)

    x = jax.random.normal(kx, (batch, obs_size), dtype=jnp.float32)

    # Deterministic parameter init (PyTorch-Linear-style uniform bounds).
    bound1 = 1.0 / jnp.sqrt(obs_size)
    w1 = jax.random.uniform(kw1, (obs_size, hidden_size), jnp.float32, -bound1, bound1)
    b1 = jax.random.uniform(kb1, (1, hidden_size), jnp.float32, -bound1, bound1)
    bound2 = 1.0 / jnp.sqrt(hidden_size)
    w2 = jax.random.uniform(kw2, (hidden_size, n_actions), jnp.float32, -bound2, bound2)
    b2 = jax.random.uniform(kb2, (1, n_actions), jnp.float32, -bound2, bound2)

    # One-time host-side repack (amortized across all forward calls).
    w1_aug, w2_pad, b2_pad = prepare_params(w1, b1, w2, b2)

    out = net_forward(x, w1_aug, w2_pad, b2_pad,
                      obs_size=obs_size, n_actions=n_actions)
    out = jax.block_until_ready(out)
    assert out.shape == (batch, n_actions)

    # Check against a pure-JAX path with the same bf16 casts (tight tolerance).
    ref_bf16 = reference_forward_bf16(x, w1_aug, w2_pad, b2_pad, obs_size, n_actions)
    assert jnp.allclose(out, ref_bf16, atol=2e-3, rtol=2e-3), \
        float(jnp.max(jnp.abs(out - ref_bf16)))

    # Sanity check against the full-f32 PyTorch-equivalent forward.
    ref_f32 = reference_forward(x, w1, b1, w2, b2)
    assert jnp.allclose(out, ref_f32, atol=5e-2, rtol=5e-2), \
        float(jnp.max(jnp.abs(out - ref_f32)))

    print("KERNEL_OK")
</pallas_src>

<mosaic_0001>
module attributes {stable_mosaic.version = 11 : i64} {
  func.func @_mlp_kernel(%arg0: i32, %arg1: memref<16x8xbf16, #tpu.memory_space<vmem>>, %arg2: memref<8x128xbf16, #tpu.memory_space<vmem>>, %arg3: memref<128x128xbf16, #tpu.memory_space<vmem>>, %arg4: memref<1x128xf32, #tpu.memory_space<vmem>>, %arg5: memref<16x128xf32, #tpu.memory_space<vmem>>) attributes {dimension_semantics = [#tpu.dimension_semantics<parallel>], iteration_bounds = array<i64: 1>, scalar_prefetch = 0 : i64, scratch_operands = 0 : i64, tpu.core_type = #tpu.core_type<tc>, window_params = [{transform_indices = @transform_0, window_bounds = array<i64: 16, 8>}, {pipeline_mode = #tpu.pipeline_mode<synchronous>, transform_indices = @transform_1, window_bounds = array<i64: 8, 128>}, {pipeline_mode = #tpu.pipeline_mode<synchronous>, transform_indices = @transform_2, window_bounds = array<i64: 128, 128>}, {pipeline_mode = #tpu.pipeline_mode<synchronous>, transform_indices = @transform_3, window_bounds = array<i64: 1, 128>}, {transform_indices = @transform_4, window_bounds = array<i64: 16, 128>}]} {
    %c0 = arith.constant 0 : index
    %c0_0 = arith.constant 0 : index
    %0 = vector.load %arg1[%c0, %c0_0] : memref<16x8xbf16, #tpu.memory_space<vmem>>, vector<16x8xbf16>
    %c0_1 = arith.constant 0 : index
    %c0_2 = arith.constant 0 : index
    %1 = vector.load %arg2[%c0_1, %c0_2] : memref<8x128xbf16, #tpu.memory_space<vmem>>, vector<8x128xbf16>
    %cst = arith.constant dense<0.000000e+00> : vector<16x128xf32>
    %2 = tpu.matmul %0, %1, %cst {dimension_numbers = #tpu.dot_dimension_numbers<[1], [0], [0], [1], [0, 0, 1, 1], [], []>} : vector<16x8xbf16>, vector<8x128xbf16>, vector<16x128xf32> -> vector<16x128xf32>
    %cst_3 = arith.constant 0.000000e+00 : f32
    %3 = vector.broadcast %cst_3 : f32 to vector<16x128xf32>
    %4 = arith.maximumf %2, %3 : vector<16x128xf32>
    %5 = arith.truncf %4 : vector<16x128xf32> to vector<16x128xbf16>
    %c0_4 = arith.constant 0 : index
    %c0_5 = arith.constant 0 : index
    %6 = vector.load %arg3[%c0_4, %c0_5] : memref<128x128xbf16, #tpu.memory_space<vmem>>, vector<128x128xbf16>
    %cst_6 = arith.constant dense<0.000000e+00> : vector<16x128xf32>
    %7 = tpu.matmul %5, %6, %cst_6 {dimension_numbers = #tpu.dot_dimension_numbers<[1], [0], [0], [1], [0, 0, 1, 1], [], []>} : vector<16x128xbf16>, vector<128x128xbf16>, vector<16x128xf32> -> vector<16x128xf32>
    %c0_7 = arith.constant 0 : index
    %c0_8 = arith.constant 0 : index
    %8 = vector.load %arg4[%c0_7, %c0_8] : memref<1x128xf32, #tpu.memory_space<vmem>>, vector<1x128xf32>
    %9 = vector.broadcast %8 : vector<1x128xf32> to vector<16x128xf32>
    %10 = arith.addf %7, %9 : vector<16x128xf32>
    %c0_9 = arith.constant 0 : index
    %c0_10 = arith.constant 0 : index
    %11 = vector.load %arg5[%c0_9, %c0_10] : memref<16x128xf32, #tpu.memory_space<vmem>>, vector<16x128xf32>
    tpu.vector_store %arg5[%c0_9, %c0_10], %10 {strides = array<i32>} : memref<16x128xf32, #tpu.memory_space<vmem>>, vector<16x128xf32>,
    return
  }
  func.func @transform_0(%arg0: i32) -> (i32, i32) {
    %c0_i32 = arith.constant 0 : i32
    %c0_i32_0 = arith.constant 0 : i32
    return %arg0, %c0_i32 : i32, i32
  }
  func.func @transform_1(%arg0: i32) -> (i32, i32) {
    %c0_i32 = arith.constant 0 : i32
    %c0_i32_0 = arith.constant 0 : i32
    %c0_i32_1 = arith.constant 0 : i32
    return %c0_i32, %c0_i32_0 : i32, i32
  }
  func.func @transform_2(%arg0: i32) -> (i32, i32) {
    %c0_i32 = arith.constant 0 : i32
    %c0_i32_0 = arith.constant 0 : i32
    %c0_i32_1 = arith.constant 0 : i32
    return %c0_i32, %c0_i32_0 : i32, i32
  }
  func.func @transform_3(%arg0: i32) -> (i32, i32) {
    %c0_i32 = arith.constant 0 : i32
    %c0_i32_0 = arith.constant 0 : i32
    %c0_i32_1 = arith.constant 0 : i32
    return %c0_i32, %c0_i32_0 : i32, i32
  }
  func.func @transform_4(%arg0: i32) -> (i32, i32) {
    %c0_i32 = arith.constant 0 : i32
    %c0_i32_0 = arith.constant 0 : i32
    return %arg0, %c0_i32 : i32, i32
  }
}

</mosaic_0001>

<bundles_post_ra>
// kernel: net_forward.1
= control target key start
LH: loop header
LB: loop body
LE: loop exit
PB: predicated region body
PF: predicated region fallthrough
CT: control target
= control target key end

     0   :  { %9 = vsyncpa [#allocation3], 0  ;;  %s295_s15 = smov [#allocation2]   ;;  %s343_s0 = inlined_call_operand.vmem [shape: bf16[16,8], index: 0, kind: input, shape index: {}]   ;;  %s344_s1 = inlined_call_operand.vmem [shape: bf16[8,128], index: 1, kind: input, shape index: {}]   ;;  %s345_s2 = inlined_call_operand.hbm [shape: bf16[128,128], index: 2, kind: input, shape index: {}]   ;;  %s346_s3 = inlined_call_operand.vmem [shape: f32[1,128], index: 3, kind: input, shape index: {}]   ;;  %s347_s4 = inlined_call_operand.vmem [shape: f32[16,128], index: 4, kind: output, shape index: {}]  }
   0x1   :  { %s19_s16 = sshll.u32 %s295_s15, 4  ;;  %s20_s16 = int_to_ptr.vmem [resolvable:$true] %s19_s16 }
   0x2   :  { %s281_s17 = scalar_lea.vmem %s20_s16, 1024  ;;  %p286_p1 = scmp.lt.s32.totalorder %s20_s16, %s20_s16 }
   0x3   :  { %p282_p0 = scmp.ne.s32.totalorder %s20_s16, %s281_s17  ;;  %p287_p2 = scmp.lt.s32.totalorder %s281_s17, %s281_s17 }
   0x5   :  { %p288_p3 = por %p287_p2, %p286_p1 }
   0x7   :  { %p289_p4 = pnand %p288_p3, %p282_p0 }
   0x9   :  { %292 = shalt.err (!%p289_p4)
}
   0xa   :  { %s296_s18 = smov 64   ;;  %s297_s19 = smov 4  }
   0xb   :  { %25 = dma.hbm_to_vmem [thread:$0]  %s345_s2, 1024, %s20_s16, [#allocation3], %s296_s18, %s296_s18, %s297_s19  }
   0xc   :  { %293 = dma.done.wait [#allocation3], 1024  }
   0xd   :  { %294 = vsyncadd [#allocation3], 4294966272  ;;  %v298_v0 = vmov 0.0   ;;  %vm299_vm0 = vmmov 0   ;;  %vm44_vm1 = vcmask 1043456   ;;  %v264_v3 = vld [vmem:[%s343_s0] sm:$0xff]  }
   0xe   :  { %233 = vmatprep.subr.bf16.mxu0 %v298_v0  ;;  %235 = vmatprep.mubr.msk.bf16.mxu0 %vm299_vm0, %v298_v0  ;;  %v34_v1 = vld [vmem:[%s344_s1] sm:$0xf]  ;;  %vm40_vm2 = vcmask 64512   ;;  %v265_v4 = vld [vmem:[#allocation2 + $0x38] sm:$0xff]   ;;  %v266_v5 = vld [vmem:[#allocation2 + $0x30] sm:$0xff]  }
   0xf   :  { %239 = vmatprep.subr.bf16.mxu1 %v298_v0  ;;  %255 = vmatprep.mubr.msk.bf16.mxu1 %vm299_vm0, %v298_v0  ;;  %v46_v2 = vsel %vm44_vm1, %v34_v1, 0  ;;  %v267_v6 = vld [vmem:[#allocation2 + $0x28] sm:$0xff]   ;;  %v268_v7 = vld [vmem:[#allocation2 + $0x20] sm:$0xff]   ;;  %v269_v8 = vld [vmem:[#allocation2 + $0x18] sm:$0xff]  }
  0x10   :  { %234 = vmatpush3.bf16.msra.mxu0 %v46_v2  ;;  %240 = vmatpush3.bf16.msra.mxu1 %v265_v4  ;;  %v270_v9 = vld [vmem:[#allocation2 + $0x10] sm:$0xff]   ;;  %v271_v10 = vld [vmem:[#allocation2 + $0x8] sm:$0xff]   ;;  %v272_v11 = vld [vmem:[#allocation2] sm:$0xff]  }
  0x11   :  { %241 = vmatprep.subr.bf16.mxu1 %v298_v0  ;;  %v213_v19 = vld [vmem:[%s346_s3] ss:$0 sm:$0xff] }
  0x13   :  { %236 = vmatmul.mubr.msk.bf16.vlgmr.msra.gmra.mxu0 %vm40_vm2, %v264_v3 }
  0x14   :  { %242 = vmatpush3.bf16.msra.mxu1 %v266_v5 }
  0x15   :  { %243 = vmatprep.subr.bf16.mxu1 %v298_v0 }
  0x18   :  { %244 = vmatpush3.bf16.msra.mxu1 %v267_v6 }
  0x19   :  { %245 = vmatprep.subr.bf16.mxu1 %v298_v0 }
  0x1c   :  { %246 = vmatpush3.bf16.msra.mxu1 %v268_v7 }
  0x1d   :  { %247 = vmatprep.subr.bf16.mxu1 %v298_v0 }
  0x20   :  { %248 = vmatpush3.bf16.msra.mxu1 %v269_v8 }
  0x21   :  { %249 = vmatprep.subr.bf16.mxu1 %v298_v0 }
  0x24   :  { %250 = vmatpush3.bf16.msra.mxu1 %v270_v9 }
  0x25   :  { %251 = vmatprep.subr.bf16.mxu1 %v298_v0 }
  0x28   :  { %252 = vmatpush3.bf16.msra.mxu1 %v271_v10 }
  0x29   :  { %253 = vmatprep.subr.bf16.mxu1 %v298_v0 }
  0x2c   :  { %254 = vmatpush3.bf16.msra.mxu1 %v272_v11 }
  0xd3   :  { %v82_v12 = vpop.f32.mrf.mxu0 }
  0xd4   :  { %v89_v15 = vmax.f32 %v82_v12, 0.0 }
  0xd5   :  { %v237_v13 = vpop.f32.mrf.mxu0 }
  0xd7   :  { %v85_v14 = vpop.f32.mrf.mxu0 }
  0xd8   :  { %v90_v16 = vmax.f32 %v85_v14, 0.0 }
  0xd9   :  { %v238_v17 = vpop.f32.mrf.mxu0 }
  0xda   :  { %v91_v18 = vpack.c.bf16 %v90_v16, %v89_v15 }
  0xdc   :  { %256 = vmatmul.mubr.bf16.vlgmr.msra.gmra.mxu1 %v91_v18 }
 0x19c   :  { %v197_v20 = vpop.f32.mrf.mxu1 }
 0x19d   :  { %v198_v21 = vadd.f32 %v213_v19, %v197_v20 }
 0x19e   :  { %v257_v22 = vpop.f32.mrf.mxu1 }
 0x19f   :  { %204 = vst [vmem:[%s347_s4] sm:$0xff] %v198_v21 }
 0x1a0   :  { %v200_v23 = vpop.f32.mrf.mxu1 }
 0x1a1   :  { %v201_v24 = vadd.f32 %v213_v19, %v200_v23 }
 0x1a2   :  { %v258_v25 = vpop.f32.mrf.mxu1 }
 0x1a3   :  { %205 = vst [vmem:[%s347_s4 + $0x8] sm:$0xff] %v201_v24 }
 0x1a4   :  { %210 = vsyncpa [#allocation3], 1 }

</bundles_post_ra>
